<compile_context>
chip_gen: v5e
topology: v5e:2x2
jax: 0.10.0
libtpu: 0.0.40
codegen_flags: <defaults>
</compile_context>

<pallas_src>
import functools
import math

import jax
import jax.numpy as jnp
from jax import lax
from jax.experimental import pallas as pl
from jax.experimental.pallas import tpu as pltpu

MIN_NORM = 1e-15
MIN_NORM_SQ = 1e-30          # == MIN_NORM**2, still a normal float32
PROJ_EPS = 4e-3              # PoincareBall eps for float32


def _round_up(v, m):
    return (v + m - 1) // m * m


def _cdiv(a, b):
    return -(-a // b)


def _vmem_capacity_bytes():
    """Per-TensorCore VMEM capacity; conservative fallback when unknown."""
    try:
        return int(pltpu.get_tpu_info().vmem_capacity_bytes)
    except Exception:
        pass
    try:
        kind = jax.devices()[0].device_kind.lower()
        if any(t in kind for t in ("v2", "v3", "v4", "v5", "v6")):
            return 128 << 20
    except Exception:
        pass
    return 64 << 20          # v7x-safe floor


# ----------------------------- hyperbolic epilogue ---------------------------
def _poincare_epilogue(mx, x_sumsq, hb, y2, c):
    """mobius_matvec rescale -> proj -> mobius_add(hyp bias) -> proj.

    mx:      (TM, D) f32   x @ W^T for this row tile
    x_sumsq: (TM, 1) f32   ||x||^2 per row
    hb:      (1, D)  f32   projected hyperbolic bias (zeros when use_bias=False)
    y2:      scalar  f32   ||hb||^2
    Only two cross-lane reductions (both over mx); everything else is per-row
    scalar math plus a single wide  alpha*mx + beta*hb  pass.
    """
    cc = jnp.float32(c)
    sqrt_c = jnp.float32(math.sqrt(c))
    inv_sqrt_c = jnp.float32(1.0 / math.sqrt(c))
    maxnorm = jnp.float32((1.0 - PROJ_EPS) / math.sqrt(c))

    mx_sumsq = jnp.sum(mx * mx, axis=-1, keepdims=True)        # XLU reduce #1
    mx_dot_hb = jnp.sum(mx * hb, axis=-1, keepdims=True)       # XLU reduce #2

    x_ss = jnp.maximum(x_sumsq, MIN_NORM_SQ)
    m_ss = jnp.maximum(mx_sumsq, MIN_NORM_SQ)
    x_norm = jnp.sqrt(x_ss)
    inv_x_norm = lax.rsqrt(x_ss)                               # EUP
    mx_norm = jnp.sqrt(m_ss)
    inv_mx_norm = lax.rsqrt(m_ss)                              # EUP

    # mobius_matvec rescale
    a = jnp.clip(sqrt_c * x_norm, -1.0 + 1e-15, 1.0 - 1e-15)
    artanh = 0.5 * (jnp.log1p(a) - jnp.log1p(-a))
    tanh_val = jnp.tanh(mx_norm * inv_x_norm * artanh)         # (TM,1), >= 0

    # NOTE: zero-row test uses ||mx||^2 == 0, which differs from the reference
    # all(mx == 0) only when every mx entry is denormal (squares underflow).
    zero_row = mx_sumsq == 0.0
    mv_scale = jnp.where(zero_row, 0.0, tanh_val * inv_sqrt_c * inv_mx_norm)
    mv_norm = jnp.where(zero_row, 0.0, tanh_val * inv_sqrt_c)  # ||mv|| analytically

    # proj(mv): fold the ball clamp into the same per-row scale
    over = mv_norm > maxnorm
    clamp = jnp.where(
        over,
        maxnorm * pl.reciprocal(jnp.maximum(mv_norm, MIN_NORM), approx=False),
        1.0)
    r_scale = mv_scale * clamp                                 # res = r_scale * mx
    res_norm = jnp.minimum(mv_norm, maxnorm)
    x2 = res_norm * res_norm                                   # ||res||^2, no re-reduce
    xy = r_scale * mx_dot_hb                                   # <res, hb>

    # mobius_add(res, hb) + final proj, all per-row scalars
    coef = 1.0 + 2.0 * cc * xy
    a_num = coef + cc * y2                                     # multiplies res
    b_num = 1.0 - cc * x2                                      # multiplies hb
    denom = jnp.maximum(coef + cc * cc * x2 * y2, MIN_NORM)
    s = pl.reciprocal(denom, approx=False)

    # ||out||^2 analytically (no third cross-lane reduce)
    out_sq = (s * s) * (a_num * a_num * x2 + 2.0 * a_num * b_num * xy
                        + b_num * b_num * y2)
    over2 = out_sq > maxnorm * maxnorm
    fproj = jnp.where(over2, maxnorm * lax.rsqrt(jnp.maximum(out_sq, MIN_NORM_SQ)), 1.0)

    alpha = fproj * s * a_num * r_scale                        # (TM, 1)
    beta = fproj * s * b_num                                   # (TM, 1)
    return alpha * mx + beta * hb                              # single wide pass


# --------------------------------- kernels -----------------------------------
def _hyp_linear_kernel_resident_w(x_ref, wt_ref, hb_ref, y2_ref, o_ref, *, c):
    """Whole padded Din in one K tile: W^T index is constant -> DMA'd once."""
    x = x_ref[...]
    xf = x.astype(jnp.float32)
    x_sumsq = jnp.sum(xf * xf, axis=-1, keepdims=True)
    mx = jnp.dot(x.astype(wt_ref.dtype), wt_ref[...],
                 preferred_element_type=jnp.float32)           # MXU
    hb = hb_ref[...].astype(jnp.float32)
    o_ref[...] = _poincare_epilogue(mx, x_sumsq, hb, y2_ref[0, 0], c).astype(o_ref.dtype)


def _hyp_linear_kernel_kgrid(x_ref, wt_ref, hb_ref, y2_ref, o_ref, xsq_acc, *, c):
    """Large Din: K grid axis; x@W^T accumulates directly into the f32 o_ref tile."""
    k = pl.program_id(1)
    nk = pl.num_programs(1)

    x = x_ref[...]
    xf = x.astype(jnp.float32)
    xsq = xf * xf
    # Lane accumulator for ||x||^2: pure VPU adds per K step, one XLU reduce at end.
    lane_sum = xsq[:, 0:128]
    for j in range(1, x_ref.shape[-1] // 128):
        lane_sum = lane_sum + xsq[:, j * 128:(j + 1) * 128]

    partial = jnp.dot(x.astype(wt_ref.dtype), wt_ref[...],
                      preferred_element_type=jnp.float32)      # MXU

    @pl.when(k == 0)
    def _init():
        xsq_acc[...] = lane_sum
        o_ref[...] = partial

    @pl.when(k > 0)
    def _accumulate():
        xsq_acc[...] += lane_sum
        o_ref[...] += partial

    @pl.when(k == nk - 1)
    def _finalize():
        x_sumsq = jnp.sum(xsq_acc[...], axis=-1, keepdims=True)
        hb = hb_ref[...].astype(jnp.float32)
        o_ref[...] = _poincare_epilogue(o_ref[...], x_sumsq, hb, y2_ref[0, 0],
                                        c).astype(o_ref.dtype)


# ------------------------------ parameter prep -------------------------------
def prepare_hyp_linear_params(weight, bias, c, *, use_bias=True,
                              matmul_dtype=jnp.bfloat16):
    """One-time (module-init) packing: padded+transposed W^T and hyperbolic bias.

    In a real module this runs once at __init__ so the per-step kernel sees a
    weight that is already lane-dense, transposed and (by default) bf16.
    """
    Dout, Din = weight.shape
    din_p = _round_up(Din, 128)
    dout_p = _round_up(Dout, 128)
    sqrt_c = math.sqrt(c)

    wt = jnp.pad(weight.astype(jnp.float32),
                 ((0, dout_p - Dout), (0, din_p - Din))).T          # (din_p, dout_p)
    if matmul_dtype is not None:
        wt = wt.astype(matmul_dtype)

    maxnorm = (1.0 - PROJ_EPS) / sqrt_c
    if use_bias:
        b = bias.reshape(1, Dout).astype(jnp.float32)
        u_norm = jnp.maximum(jnp.linalg.norm(b, axis=-1, keepdims=True), MIN_NORM)
        hb = jnp.tanh(sqrt_c * u_norm) * b / (sqrt_c * u_norm)       # expmap0
        hb_norm = jnp.maximum(jnp.linalg.norm(hb, axis=-1, keepdims=True), MIN_NORM)
        hb = jnp.where(hb_norm > maxnorm, hb / hb_norm * maxnorm, hb)  # proj
    else:
        # mobius_add(res, 0) == res and the final proj is then a no-op, so a zero
        # hyperbolic bias reproduces the use_bias=False branch exactly.
        hb = jnp.zeros((1, Dout), jnp.float32)

    hb_p = jnp.pad(hb, ((0, 0), (0, dout_p - Dout)))
    hb_y2 = jnp.sum(hb * hb, axis=-1, keepdims=True).astype(jnp.float32)  # (1, 1)
    return dict(wt=wt, hb=hb_p, hb_y2=hb_y2, din=Din, dout=Dout, c=float(c))


def _divisor_tile(total, limit):
    """Largest multiple of 128 dividing `total` (a multiple of 128) and <= limit."""
    g = total // 128
    best = 1
    for d in range(1, g + 1):
        if g % d == 0 and d * 128 <= limit:
            best = d
    return best * 128


# --------------------------------- wrapper -----------------------------------
def hyp_linear_apply(x, params, *, block_m=256, block_k=None, force_k_grid=False):
    """x: (N, Din). Returns (N, Dout) in x.dtype."""
    N, Din = x.shape
    assert Din == params["din"], "input feature dim mismatch"
    Dout = params["dout"]
    c = params["c"]
    wt, hb, hb_y2 = params["wt"], params["hb"], params["hb_y2"]
    din_p, dout_p = wt.shape
    w_bytes = jnp.dtype(wt.dtype).itemsize

    # Pad the contraction dim of x only when Din is not lane-aligned; the M dim
    # is never padded (ragged last row-tile is handled by the cdiv grid).
    if din_p != Din:
        x_in = jnp.pad(x.astype(jnp.float32), ((0, 0), (0, din_p - Din)))
    else:
        x_in = x.astype(jnp.float32)

    vmem_cap = _vmem_capacity_bytes()
    budget = int(0.75 * vmem_cap)

    # ---- pick the M tile -----------------------------------------------------
    bm = max(8, min(int(block_m), _round_up(max(N, 1), 8)))
    if _cdiv(N, bm) < 2 and N >= 16:
        # keep >= 2 M tiles so both v7x TensorCores get work on the parallel axis
        bm = max(8, _round_up(_cdiv(N, 2), 8))

    def working_set(bm_, bk_, k_grid):
        return (2 * bm_ * bk_ * 4                  # x tile (f32), double-buffered
                + 2 * bk_ * dout_p * w_bytes       # W^T tile, double-buffered
                + 2 * bm_ * dout_p * 4             # out tile (f32), double-buffered
                + 2 * 8 * dout_p * 4               # hyp-bias row (sublane padded)
                + (bm_ * 128 * 4 if k_grid else 0))  # ||x||^2 lane accumulator

    # ---- prefer a single resident W^T tile (weight DMA'd exactly once) --------
    use_k_grid = bool(force_k_grid)
    if not use_k_grid:
        while bm > 8 and working_set(bm, din_p, False) > budget:
            bm = max(8, _round_up(bm // 2, 8))
        use_k_grid = working_set(bm, din_p, False) > budget

    if not use_k_grid:
        bk = din_p
    else:
        bk = _divisor_tile(din_p, max(128, min(int(block_k or 512), din_p)))
        while working_set(bm, bk, True) > budget:
            if bk > 128:
                bk = _divisor_tile(din_p, bk // 2)
            elif bm > 8:
                bm = max(8, _round_up(bm // 2, 8))
            else:
                break

    grid_m = _cdiv(N, bm)
    vmem_limit = int(min(vmem_cap,
                         max(working_set(bm, bk, use_k_grid) + (4 << 20), 16 << 20)))

    if not use_k_grid:
        out = pl.pallas_call(
            functools.partial(_hyp_linear_kernel_resident_w, c=c),
            out_shape=jax.ShapeDtypeStruct((N, dout_p), jnp.float32),
            grid_spec=pltpu.PrefetchScalarGridSpec(
                num_scalar_prefetch=0,
                grid=(grid_m,),
                in_specs=[
                    pl.BlockSpec((bm, din_p), lambda i: (i, 0)),      # x row tile
                    pl.BlockSpec((din_p, dout_p), lambda i: (0, 0)),  # resident W^T
                    pl.BlockSpec((1, dout_p), lambda i: (0, 0)),      # hyp bias row
                    pl.BlockSpec(memory_space=pltpu.MemorySpace.SMEM),  # ||hb||^2
                ],
                out_specs=pl.BlockSpec((bm, dout_p), lambda i: (i, 0)),
            ),
            compiler_params=pltpu.CompilerParams(
                dimension_semantics=("parallel",),
                vmem_limit_bytes=vmem_limit),
        )(x_in, wt, hb, hb_y2)
    else:
        nk = din_p // bk
        out = pl.pallas_call(
            functools.partial(_hyp_linear_kernel_kgrid, c=c),
            out_shape=jax.ShapeDtypeStruct((N, dout_p), jnp.float32),
            grid_spec=pltpu.PrefetchScalarGridSpec(
                num_scalar_prefetch=0,
                grid=(grid_m, nk),
                in_specs=[
                    pl.BlockSpec((bm, bk), lambda i, k: (i, k)),       # x tile
                    pl.BlockSpec((bk, dout_p), lambda i, k: (k, 0)),   # W^T K tile
                    pl.BlockSpec((1, dout_p), lambda i, k: (0, 0)),    # hyp bias row
                    pl.BlockSpec(memory_space=pltpu.MemorySpace.SMEM),  # ||hb||^2
                ],
                out_specs=pl.BlockSpec((bm, dout_p), lambda i, k: (i, 0)),
                scratch_shapes=[pltpu.VMEM((bm, 128), jnp.float32)],
            ),
            compiler_params=pltpu.CompilerParams(
                dimension_semantics=("parallel", "arbitrary"),
                vmem_limit_bytes=vmem_limit),
        )(x_in, wt, hb, hb_y2)

    if dout_p != Dout:
        out = out[:, :Dout]
    return out.astype(x.dtype)


def hyp_linear(x, weight, bias, c, *, use_bias=True, matmul_dtype=jnp.bfloat16,
               block_m=256, block_k=None, force_k_grid=False):
    """Per-call convenience wrapper. In a real module, call
    prepare_hyp_linear_params once at init and hyp_linear_apply per forward."""
    params = prepare_hyp_linear_params(weight, bias, c, use_bias=use_bias,
                                       matmul_dtype=matmul_dtype)
    return hyp_linear_apply(x, params, block_m=block_m, block_k=block_k,
                            force_k_grid=force_k_grid)


# ---------------------------- pure-JAX reference -----------------------------
def _ref_hyp_linear(x, weight, bias, c, use_bias=True):
    sqrt_c = math.sqrt(c)

    def proj(v):
        norm = jnp.maximum(jnp.linalg.norm(v, axis=-1, keepdims=True), MIN_NORM)
        maxnorm = (1.0 - PROJ_EPS) / sqrt_c
        return jnp.where(norm > maxnorm, v / norm * maxnorm, v)

    x_norm = jnp.maximum(jnp.linalg.norm(x, axis=-1, keepdims=True), MIN_NORM)
    mx = x @ weight.T
    mx_norm = jnp.maximum(jnp.linalg.norm(mx, axis=-1, keepdims=True), MIN_NORM)
    a = jnp.clip(sqrt_c * x_norm, -1 + 1e-15, 1 - 1e-15)
    artanh = 0.5 * (jnp.log1p(a) - jnp.log1p(-a))
    res_c = jnp.tanh(mx_norm / x_norm * artanh) * mx / (mx_norm * sqrt_c)
    mv = jnp.where(jnp.all(mx == 0, axis=-1, keepdims=True), 0.0, res_c)
    res = proj(mv)
    if not use_bias:
        return res

    u = bias.reshape(1, -1)
    u_norm = jnp.maximum(jnp.linalg.norm(u, axis=-1, keepdims=True), MIN_NORM)
    hb = proj(jnp.tanh(sqrt_c * u_norm) * u / (sqrt_c * u_norm))

    x2 = jnp.sum(res * res, -1, keepdims=True)
    y2 = jnp.sum(hb * hb, -1, keepdims=True)
    xy = jnp.sum(res * hb, -1, keepdims=True)
    num = (1 + 2 * c * xy + c * y2) * res + (1 - c * x2) * hb
    den = jnp.maximum(1 + 2 * c * xy + c * c * x2 * y2, MIN_NORM)
    return proj(num / den)


if __name__ == "__main__":
    C = 1.0
    key = jax.random.PRNGKey(0)
    k1, k2, k3, k4, k5, k6 = jax.random.split(key, 6)

    # ---- test 1: resident-weight path, f32 MXU (exact module math) ----------
    N, IN_F, OUT_F = 16, 32, 32
    bound = math.sqrt(2.0) * math.sqrt(6.0 / (IN_F + OUT_F))   # xavier_uniform, gain sqrt(2)
    weight = jax.random.uniform(k1, (OUT_F, IN_F), jnp.float32, -bound, bound)
    bias = 0.1 * jax.random.normal(k2, (OUT_F,), jnp.float32)
    x = 0.05 * jax.random.normal(k3, (N, IN_F), jnp.float32)    # point inside the ball

    out = jax.block_until_ready(
        hyp_linear(x, weight, bias, C, use_bias=True, matmul_dtype=jnp.float32))
    ref = _ref_hyp_linear(x, weight, bias, C)
    assert out.shape == (N, OUT_F)
    assert jnp.allclose(out, ref, atol=1e-5, rtol=1e-4), (
        "resident-W f32 mismatch: max |diff| = "
        f"{float(jnp.max(jnp.abs(out - ref)))}")

    # ---- test 2: forced K-grid path (weight streamed in block_k tiles), f32 -
    N2, IN2, OUT2 = 24, 256, 64
    bound2 = math.sqrt(2.0) * math.sqrt(6.0 / (IN2 + OUT2))
    weight2 = jax.random.uniform(k4, (OUT2, IN2), jnp.float32, -bound2, bound2)
    bias2 = 0.1 * jax.random.normal(k5, (OUT2,), jnp.float32)
    x2 = 0.02 * jax.random.normal(k6, (N2, IN2), jnp.float32)

    out2 = jax.block_until_ready(
        hyp_linear(x2, weight2, bias2, C, use_bias=True, matmul_dtype=jnp.float32,
                   block_m=8, block_k=128, force_k_grid=True))
    ref2 = _ref_hyp_linear(x2, weight2, bias2, C)
    assert out2.shape == (N2, OUT2)
    assert jnp.allclose(out2, ref2, atol=1e-5, rtol=1e-4), (
        "K-grid f32 mismatch: max |diff| = "
        f"{float(jnp.max(jnp.abs(out2 - ref2)))}")

    # ---- test 3: default bf16-weight MXU path (looser tolerance) -------------
    out3 = jax.block_until_ready(hyp_linear(x, weight, bias, C, use_bias=True))
    assert jnp.allclose(out3, ref, atol=1e-2, rtol=5e-2), (
        "bf16 MXU path mismatch: max |diff| = "
        f"{float(jnp.max(jnp.abs(out3 - ref)))}")

    print("KERNEL_OK")
</pallas_src>

<mosaic_0001>
module attributes {stable_mosaic.version = 11 : i64} {
  func.func @_hyp_linear_kernel_resident_w(%arg0: i32, %arg1: memref<8x128xf32, #tpu.memory_space<vmem>>, %arg2: memref<128x128xf32, #tpu.memory_space<vmem>>, %arg3: memref<1x128xf32, #tpu.memory_space<vmem>>, %arg4: memref<1x1xf32, #tpu.memory_space<smem>>, %arg5: memref<8x128xf32, #tpu.memory_space<vmem>>) attributes {dimension_semantics = [#tpu.dimension_semantics<parallel>], iteration_bounds = array<i64: 2>, scalar_prefetch = 0 : i64, scratch_operands = 0 : i64, tpu.core_type = #tpu.core_type<tc>, window_params = [{transform_indices = @transform_0, window_bounds = array<i64: 8, 128>}, {pipeline_mode = #tpu.pipeline_mode<synchronous>, transform_indices = @transform_1, window_bounds = array<i64: 128, 128>}, {pipeline_mode = #tpu.pipeline_mode<synchronous>, transform_indices = @transform_2, window_bounds = array<i64: 1, 128>}, {transform_indices = @transform_3, window_bounds = array<i64: 1, 1>}, {transform_indices = @transform_4, window_bounds = array<i64: 8, 128>}]} {
    %c0 = arith.constant 0 : index
    %c0_0 = arith.constant 0 : index
    %0 = vector.load %arg1[%c0, %c0_0] : memref<8x128xf32, #tpu.memory_space<vmem>>, vector<8x128xf32>
    %1 = arith.mulf %0, %0 : vector<8x128xf32>
    %cst = arith.constant dense<0.000000e+00> : vector<8xf32>
    %2 = vector.multi_reduction <add>, %1, %cst [1] : vector<8x128xf32> to vector<8xf32>
    %3 = vector.shape_cast %2 : vector<8xf32> to vector<8x1xf32>
    %c0_1 = arith.constant 0 : index
    %c0_2 = arith.constant 0 : index
    %4 = vector.load %arg2[%c0_1, %c0_2] : memref<128x128xf32, #tpu.memory_space<vmem>>, vector<128x128xf32>
    %cst_3 = arith.constant dense<0.000000e+00> : vector<8x128xf32>
    %5 = tpu.matmul %0, %4, %cst_3 {dimension_numbers = #tpu.dot_dimension_numbers<[1], [0], [0], [1], [0, 0, 1, 1], [], []>} : vector<8x128xf32>, vector<128x128xf32>, vector<8x128xf32> -> vector<8x128xf32>
    %c0_4 = arith.constant 0 : index
    %c0_5 = arith.constant 0 : index
    %6 = vector.load %arg3[%c0_4, %c0_5] : memref<1x128xf32, #tpu.memory_space<vmem>>, vector<1x128xf32>
    %c0_6 = arith.constant 0 : index
    %c0_7 = arith.constant 0 : index
    %7 = memref.load %arg4[%c0_6, %c0_7] : memref<1x1xf32, #tpu.memory_space<smem>>
    %8 = arith.mulf %5, %5 : vector<8x128xf32>
    %cst_8 = arith.constant dense<0.000000e+00> : vector<8xf32>
    %9 = vector.multi_reduction <add>, %8, %cst_8 [1] : vector<8x128xf32> to vector<8xf32>
    %10 = vector.shape_cast %9 : vector<8xf32> to vector<8x1xf32>
    %11 = vector.broadcast %6 : vector<1x128xf32> to vector<8x128xf32>
    %12 = arith.mulf %5, %11 : vector<8x128xf32>
    %cst_9 = arith.constant dense<0.000000e+00> : vector<8xf32>
    %13 = vector.multi_reduction <add>, %12, %cst_9 [1] : vector<8x128xf32> to vector<8xf32>
    %14 = vector.shape_cast %13 : vector<8xf32> to vector<8x1xf32>
    %cst_10 = arith.constant 1.000000e-30 : f32
    %15 = vector.broadcast %cst_10 : f32 to vector<8x1xf32>
    %16 = arith.maximumf %3, %15 : vector<8x1xf32>
    %cst_11 = arith.constant 1.000000e-30 : f32
    %17 = vector.broadcast %cst_11 : f32 to vector<8x1xf32>
    %18 = arith.maximumf %10, %17 : vector<8x1xf32>
    %19 = math.sqrt %16 : vector<8x1xf32>
    %20 = math.rsqrt %16 : vector<8x1xf32>
    %21 = math.sqrt %18 : vector<8x1xf32>
    %22 = math.rsqrt %18 : vector<8x1xf32>
    %cst_12 = arith.constant 1.000000e+00 : f32
    %23 = vector.broadcast %cst_12 : f32 to vector<8x1xf32>
    %24 = arith.mulf %23, %19 : vector<8x1xf32>
    %cst_13 = arith.constant -1.000000e+00 : f32
    %cst_14 = arith.constant 1.000000e+00 : f32
    %25 = vector.broadcast %cst_13 : f32 to vector<8x1xf32>
    %26 = arith.maximumf %25, %24 : vector<8x1xf32>
    %27 = vector.broadcast %cst_14 : f32 to vector<8x1xf32>
    %28 = arith.minimumf %27, %26 : vector<8x1xf32>
    %29 = math.log1p %28 : vector<8x1xf32>
    %cst_15 = arith.constant 0.000000e+00 : f32
    %30 = vector.broadcast %cst_15 : f32 to vector<8x1xf32>
    %31 = arith.subf %30, %28 : vector<8x1xf32>
    %32 = math.log1p %31 : vector<8x1xf32>
    %33 = arith.subf %29, %32 : vector<8x1xf32>
    %cst_16 = arith.constant 5.000000e-01 : f32
    %34 = vector.broadcast %cst_16 : f32 to vector<8x1xf32>
    %35 = arith.mulf %34, %33 : vector<8x1xf32>
    %36 = arith.mulf %21, %20 : vector<8x1xf32>
    %37 = arith.mulf %36, %35 : vector<8x1xf32>
    %38 = math.tanh %37 : vector<8x1xf32>
    %cst_17 = arith.constant 0.000000e+00 : f32
    %39 = vector.broadcast %cst_17 : f32 to vector<8x1xf32>
    %40 = arith.cmpf oeq, %10, %39 : vector<8x1xf32>
    %cst_18 = arith.constant 1.000000e+00 : f32
    %41 = vector.broadcast %cst_18 : f32 to vector<8x1xf32>
    %42 = arith.mulf %38, %41 : vector<8x1xf32>
    %43 = arith.mulf %42, %22 : vector<8x1xf32>
    %cst_19 = arith.constant 0.000000e+00 : f32
    %44 = vector.broadcast %cst_19 : f32 to vector<8x1xf32>
    %45 = arith.select %40, %44, %43 : vector<8x1xi1>, vector<8x1xf32>
    %cst_20 = arith.constant 1.000000e+00 : f32
    %46 = vector.broadcast %cst_20 : f32 to vector<8x1xf32>
    %47 = arith.mulf %38, %46 : vector<8x1xf32>
    %cst_21 = arith.constant 0.000000e+00 : f32
    %48 = vector.broadcast %cst_21 : f32 to vector<8x1xf32>
    %49 = arith.select %40, %48, %47 : vector<8x1xi1>, vector<8x1xf32>
    %cst_22 = arith.constant 0.995999991 : f32
    %50 = vector.broadcast %cst_22 : f32 to vector<8x1xf32>
    %51 = arith.cmpf ogt, %49, %50 : vector<8x1xf32>
    %cst_23 = arith.constant 1.000000e-15 : f32
    %52 = vector.broadcast %cst_23 : f32 to vector<8x1xf32>
    %53 = arith.maximumf %49, %52 : vector<8x1xf32>
    %54 = tpu.reciprocal %53 : vector<8x1xf32> -> vector<8x1xf32>
    %cst_24 = arith.constant 0.995999991 : f32
    %55 = vector.broadcast %cst_24 : f32 to vector<8x1xf32>
    %56 = arith.mulf %55, %54 : vector<8x1xf32>
    %cst_25 = arith.constant 1.000000e+00 : f32
    %57 = vector.broadcast %cst_25 : f32 to vector<8x1xf32>
    %58 = arith.select %51, %56, %57 : vector<8x1xi1>, vector<8x1xf32>
    %59 = arith.mulf %45, %58 : vector<8x1xf32>
    %cst_26 = arith.constant 0.995999991 : f32
    %60 = vector.broadcast %cst_26 : f32 to vector<8x1xf32>
    %61 = arith.minimumf %49, %60 : vector<8x1xf32>
    %62 = arith.mulf %61, %61 : vector<8x1xf32>
    %63 = arith.mulf %59, %14 : vector<8x1xf32>
    %cst_27 = arith.constant 2.000000e+00 : f32
    %cst_28 = arith.constant 1.000000e+00 : f32
    %64 = arith.mulf %cst_27, %cst_28 : f32
    %65 = vector.broadcast %64 : f32 to vector<8x1xf32>
    %66 = arith.mulf %65, %63 : vector<8x1xf32>
    %cst_29 = arith.constant 1.000000e+00 : f32
    %67 = vector.broadcast %cst_29 : f32 to vector<8x1xf32>
    %68 = arith.addf %67, %66 : vector<8x1xf32>
    %cst_30 = arith.constant 1.000000e+00 : f32
    %69 = arith.mulf %cst_30, %7 : f32
    %70 = vector.broadcast %69 : f32 to vector<8x1xf32>
    %71 = arith.addf %68, %70 : vector<8x1xf32>
    %cst_31 = arith.constant 1.000000e+00 : f32
    %72 = vector.broadcast %cst_31 : f32 to vector<8x1xf32>
    %73 = arith.mulf %72, %62 : vector<8x1xf32>
    %cst_32 = arith.constant 1.000000e+00 : f32
    %74 = vector.broadcast %cst_32 : f32 to vector<8x1xf32>
    %75 = arith.subf %74, %73 : vector<8x1xf32>
    %cst_33 = arith.constant 1.000000e+00 : f32
    %cst_34 = arith.constant 1.000000e+00 : f32
    %76 = arith.mulf %cst_33, %cst_34 : f32
    %77 = vector.broadcast %76 : f32 to vector<8x1xf32>
    %78 = arith.mulf %77, %62 : vector<8x1xf32>
    %79 = vector.broadcast %7 : f32 to vector<8x1xf32>
    %80 = arith.mulf %78, %79 : vector<8x1xf32>
    %81 = arith.addf %68, %80 : vector<8x1xf32>
    %cst_35 = arith.constant 1.000000e-15 : f32
    %82 = vector.broadcast %cst_35 : f32 to vector<8x1xf32>
    %83 = arith.maximumf %81, %82 : vector<8x1xf32>
    %84 = tpu.reciprocal %83 : vector<8x1xf32> -> vector<8x1xf32>
    %85 = arith.mulf %84, %84 : vector<8x1xf32>
    %86 = arith.mulf %71, %71 : vector<8x1xf32>
    %87 = arith.mulf %86, %62 : vector<8x1xf32>
    %cst_36 = arith.constant 2.000000e+00 : f32
    %88 = vector.broadcast %cst_36 : f32 to vector<8x1xf32>
    %89 = arith.mulf %88, %71 : vector<8x1xf32>
    %90 = arith.mulf %89, %75 : vector<8x1xf32>
    %91 = arith.mulf %90, %63 : vector<8x1xf32>
    %92 = arith.addf %87, %91 : vector<8x1xf32>
    %93 = arith.mulf %75, %75 : vector<8x1xf32>
    %94 = vector.broadcast %7 : f32 to vector<8x1xf32>
    %95 = arith.mulf %93, %94 : vector<8x1xf32>
    %96 = arith.addf %92, %95 : vector<8x1xf32>
    %97 = arith.mulf %85, %96 : vector<8x1xf32>
    %cst_37 = arith.constant 0.995999991 : f32
    %cst_38 = arith.constant 0.995999991 : f32
    %98 = arith.mulf %cst_37, %cst_38 : f32
    %99 = vector.broadcast %98 : f32 to vector<8x1xf32>
    %100 = arith.cmpf ogt, %97, %99 : vector<8x1xf32>
    %cst_39 = arith.constant 1.000000e-30 : f32
    %101 = vector.broadcast %cst_39 : f32 to vector<8x1xf32>
    %102 = arith.maximumf %97, %101 : vector<8x1xf32>
    %103 = math.rsqrt %102 : vector<8x1xf32>
    %cst_40 = arith.constant 0.995999991 : f32
    %104 = vector.broadcast %cst_40 : f32 to vector<8x1xf32>
    %105 = arith.mulf %104, %103 : vector<8x1xf32>
    %cst_41 = arith.constant 1.000000e+00 : f32
    %106 = vector.broadcast %cst_41 : f32 to vector<8x1xf32>
    %107 = arith.select %100, %105, %106 : vector<8x1xi1>, vector<8x1xf32>
    %108 = arith.mulf %107, %84 : vector<8x1xf32>
    %109 = arith.mulf %108, %71 : vector<8x1xf32>
    %110 = arith.mulf %109, %59 : vector<8x1xf32>
    %111 = arith.mulf %107, %84 : vector<8x1xf32>
    %112 = arith.mulf %111, %75 : vector<8x1xf32>
    %113 = vector.broadcast %110 : vector<8x1xf32> to vector<8x128xf32>
    %114 = arith.mulf %113, %5 : vector<8x128xf32>
    %115 = vector.broadcast %112 : vector<8x1xf32> to vector<8x128xf32>
    %116 = vector.broadcast %6 : vector<1x128xf32> to vector<8x128xf32>
    %117 = arith.mulf %115, %116 : vector<8x128xf32>
    %118 = arith.addf %114, %117 : vector<8x128xf32>
    %c0_42 = arith.constant 0 : index
    %c0_43 = arith.constant 0 : index
    %119 = vector.load %arg5[%c0_42, %c0_43] : memref<8x128xf32, #tpu.memory_space<vmem>>, vector<8x128xf32>
    tpu.vector_store %arg5[%c0_42, %c0_43], %118 {strides = array<i32>} : memref<8x128xf32, #tpu.memory_space<vmem>>, vector<8x128xf32>,
    return
  }
  func.func @transform_0(%arg0: i32) -> (i32, i32) {
    %c0_i32 = arith.constant 0 : i32
    %c0_i32_0 = arith.constant 0 : i32
    return %arg0, %c0_i32 : i32, i32
  }
  func.func @transform_1(%arg0: i32) -> (i32, i32) {
    %c0_i32 = arith.constant 0 : i32
    %c0_i32_0 = arith.constant 0 : i32
    %c0_i32_1 = arith.constant 0 : i32
    return %c0_i32, %c0_i32_0 : i32, i32
  }
  func.func @transform_2(%arg0: i32) -> (i32, i32) {
    %c0_i32 = arith.constant 0 : i32
    %c0_i32_0 = arith.constant 0 : i32
    %c0_i32_1 = arith.constant 0 : i32
    return %c0_i32, %c0_i32_0 : i32, i32
  }
  func.func @transform_3(%arg0: i32) -> (i32, i32) {
    %c0_i32 = arith.constant 0 : i32
    %c0_i32_0 = arith.constant 0 : i32
    %c0_i32_1 = arith.constant 0 : i32
    return %c0_i32, %c0_i32_0 : i32, i32
  }
  func.func @transform_4(%arg0: i32) -> (i32, i32) {
    %c0_i32 = arith.constant 0 : i32
    %c0_i32_0 = arith.constant 0 : i32
    return %arg0, %c0_i32 : i32, i32
  }
}

</mosaic_0001>

<bundles_post_ra>
// kernel: tpu_custom_call.1
= control target key start
LH: loop header
LB: loop body
LE: loop exit
PB: predicated region body
PF: predicated region fallthrough
CT: control target
= control target key end

     0   :  { %s948_s0 = inlined_call_operand.hbm [shape: f32[16,128], index: 0, kind: input, shape index: {}]   ;;  %s949_s1 = inlined_call_operand.hbm [shape: f32[128,128], index: 1, kind: input, shape index: {}]   ;;  %s950_s2 = inlined_call_operand.vmem [shape: f32[1,128], index: 2, kind: input, shape index: {}]   ;;  %s951_s3 = inlined_call_operand.<no memory space> [shape: f32[1,1], index: 3, kind: input, shape index: {}]   ;;  %s952_s4 = inlined_call_operand.hbm [shape: f32[16,128], index: 4, kind: output, shape index: {}]  }
   0x1   :  { %9 = sst [smem:[#allocation2]] %s951_s3 }
   0x2   :  { %10 = vsyncpa [#allocation4], 0 }
   0x3   :  { %12 = vsyncpa [#allocation4 + $0x1], 0 }
   0x4   :  { %13 = vsyncpa [#allocation7], 0 }
   0x5   :  { %14 = vsyncpa [#allocation5], 0 }
   0x6   :  { %16 = vsyncpa [#allocation5 + $0x1], 0  ;;  %s787_s17 = smov 0   ;;  %s789_s18 = smov 0  }
   0x7   :  { %s791_s19 = smov 0   ;;  %s793_s20 = smov 0  }
   0x8 LB: > { %s153_s22 = sshll.u32 %s949_s1, 4  ;;  %s811_s23 = sadd.s32 4294967295, %s754_s20   ;;  %s754_s20 = sphi %s793_s20, %s962_s20   ;;  %s750_s19 = sphi %s791_s19, %s961_s19   ;;  %s746_s18 = sphi %s789_s18, %s960_s18   ;;  %s742_s17 = sphi %s787_s17, %s959_s17   ;;  %s154_s22 = int_to_ptr.hbm [resolvable:$true] %s153_s22 }
   0x9   : > { %p534_p0 = scmp.ge.s32.totalorder %s754_s20, 1  ;;  %p43_p1 = scmp.eq.s32.totalorder %s811_s23, 0 }
   0xa   : > { %p142_p2 = scmp.lt.s32.totalorder %s754_s20, 3  ;;  %s756_s25 = smov [#allocation6]  }
   0xb   : > { %s155_s26 = sshll.u32 %s756_s25, 4  ;;  %s757_s27 = smov 128   ;;  %s156_s26 = int_to_ptr.vmem [resolvable:$true] %s155_s26 }
   0xc   : > { %p816_p3 = pnand %p534_p0, %p142_p2  ;;  %s758_s28 = smov 8  }
   0xd   : > { %s533_s29 = sadd.s32 4294967294, %s754_s20   ;;  %s827_s30 = sadd.s32 1, %s754_s20  }
   0xe   : > { %p556_p4 = pneg %p816_p3  ;;  %s29_s5 = sadd.s32 1, %s750_s19 }
   0xf   : > { %s26_s6 = ssub.s32 %s754_s20, %s827_s30  ;;  %p36_p7 = scmp.ne.s32.totalorder %s750_s19, %s746_s18 }
  0x10   : > { %p557_p6 = pnand %p556_p4, %p43_p1  ;;  %p27_p8 = scmp.eq.s32.totalorder %s26_s6, 0 }
  0x11   : > { %p37_p9 = scmp.eq.s32.totalorder %s754_s20, 0  ;;  %p42_p10 = scmp.ne.s32.totalorder %s746_s18, %s742_s17 }
  0x12   : > { %559 = dma.hbm_to_vmem [thread:$0]  (!%p557_p6), %s154_s22, 2048, %s156_s26, [#allocation7], %s757_s27, %s757_s27, %s758_s28  }
  0x13   : > { %p129_p11 = scmp.eq.s32.totalorder %s811_s23, 1  ;;  %p843_p12 = por %p43_p1, %p42_p10 }
  0x14   : > { %s839_s7 = scalar_select %p27_p8, %s750_s19, %s29_s5  }
  0x15   : > { %p847_p13 = por %p129_p11, %p36_p7  ;;  %p135_p0 = scmp.eq.s32.totalorder %s533_s29, 1 }
  0x16   : > { %p38_p2 = por %p37_p9, %p36_p7  ;;  %s175_s10 = sand.u32 1, %s750_s19  }
  0x17   : > { %p852_p4 = por %p135_p0, %p42_p10  ;;  %p569_p6 = scmp.lt.s32.totalorder %s754_s20, 2 }
  0x18   : > { %s537_s12 = sshll.u32 %s175_s10, 3  ;;  %s538_s13 = sshll.u32 %s754_s20, 3 }
  0x19   : > { %s183_s16 = scalar_lea.hbm %s948_s0, %s538_s13  ;;  %s179_s21 = scalar_lea.vmem [#allocation3], %s537_s12 }
  0x1a   : > { %s185_s3 = sshll.u32 %s183_s16, 4  ;;  %s187_s22 = sshll.u32 %s179_s21, 4  ;;  %s186_s3 = int_to_ptr.hbm [resolvable:$true] %s185_s3  ;;  %s188_s22 = int_to_ptr.vmem [resolvable:$true] %s187_s22 }
  0x1b   : > { %p861_p8 = pnand %p569_p6, %p38_p2  ;;  %s176_s26 = scalar_lea.sflag [#allocation4], %s175_s10 }
  0x1c   : > { %s654_s27 = sshra.s32 %s186_s3, 4  ;;  %s661_s6 = scalar_lea.hbm %s948_s0, 16  ;;  %s655_s27 = int_to_ptr.hbm [resolvable:$true] %s654_s27 }
  0x1d   : > { %s656_s28 = scalar_lea.hbm %s655_s27, 8  ;;  %p658_p9 = pneg %p861_p8 }
  0x1e   : > { %p657_p7 = scmp.ne.s32.totalorder %s655_s27, %s656_s28  ;;  %p662_p0 = scmp.lt.s32.totalorder %s655_s27, %s948_s0 }
  0x1f   : > { %p663_p2 = scmp.lt.s32.totalorder %s661_s6, %s656_s28 }
  0x20   : > { %p659_p10 = pnand %p658_p9, %p657_p7 }
  0x21   : > { %p664_p6 = por %p663_p2, %p662_p0 }
  0x22   : > { %p660_p11 = pneg %p659_p10 }
  0x24   : > { %p665_p5 = pnand %p664_p6, %p660_p11 }
  0x26   : > { %668 = shalt.err (!%p665_p5)
}
  0x27   : > { %563 = dma.hbm_to_vmem [thread:$0]  (!%p861_p8), %s186_s3, 128, %s188_s22, %s176_s26  }
  0x28   : > { %196 = sbr.rel (%p816_p3) target bundleno = 450 (0x1c2), region = 36  ;;  %s878_s10 = sand.u32 (!%p816_p3), 1, %s746_s18  }
  0x29   : > { %s540_s14 = sshll.u32 (!%p816_p3), %s878_s10, 3  ;;  %s199_s15 = scalar_lea.sflag (!%p816_p3), [#allocation4], %s878_s10 }
  0x2a   : > { %s202_s16 = scalar_lea.vmem (!%p816_p3), [#allocation3], %s540_s14 }
  0x2d   : > { %729 = dma.done.wait (%p843_p12), %s199_s15, 128  }
  0x2e   : > { %731 = vsyncadd (%p843_p12), %s199_s15, 4294967168 }
  0x2f   : > { %733 = dma.done.wait (%p43_p1), [#allocation7], 2048  }
  0x30   : > { %735 = vsyncadd (%p43_p1), [#allocation7], 4294965248  ;;  %v252_v0 = vld [vmem:[#allocation6 + $0x78] sm:$0xff]  ;;  %v251_v1 = vld [vmem:[#allocation6 + $0x70] sm:$0xff]  ;;  %s274_s3 = sld [smem:[#allocation2]]  ;;  %s545_s21 = sshll.u32 %s811_s23, 3 }
  0x31   : > { %253 = vmatpush.msra.mxu0 %v252_v0  ;;  %v250_v2 = vld [vmem:[#allocation6 + $0x68] sm:$0xff]  ;;  %v249_v3 = vld [vmem:[#allocation6 + $0x60] sm:$0xff]  ;;  %v233_v4 = vld [vmem:[%s202_s16] sm:$0xff]  ;;  %s448_s26 = scalar_lea.hbm %s952_s4, %s545_s21  ;;  %s232_s27 = scalar_lea.vmem [#allocation8], %s540_s14 }
  0x32   : > { %v248_v5 = vld [vmem:[#allocation6 + $0x58] sm:$0xff]  ;;  %v234_v6 = vmul.f32 %v233_v4, %v233_v4  ;;  %v247_v7 = vld [vmem:[#allocation6 + $0x50] sm:$0xff]  ;;  %v246_v8 = vld [vmem:[#allocation6 + $0x48] sm:$0xff]  ;;  %s450_s28 = sshll.u32 %s232_s27, 4  ;;  %s452_s29 = sshll.u32 %s448_s26, 4  ;;  %s451_s28 = int_to_ptr.vmem [resolvable:$true] %s450_s28  ;;  %s453_s29 = int_to_ptr.hbm [resolvable:$true] %s452_s29 }
  0x33   : > { %254 = vmatpush.msra.mxu0 %v251_v1  ;;  %v245_v9 = vld [vmem:[#allocation6 + $0x40] sm:$0xff]  ;;  %v244_v10 = vld [vmem:[#allocation6 + $0x38] sm:$0xff]  ;;  %v243_v11 = vld [vmem:[#allocation6 + $0x30] sm:$0xff]  ;;  %s438_s23 = scalar_lea.sflag [#allocation5], %s878_s10  ;;  %s698_s5 = sshra.s32 %s453_s29, 4  ;;  %s699_s5 = int_to_ptr.hbm [resolvable:$true] %s698_s5 }
  0x34   : > { %235 = vadd.xlane.f32.xlu0 %v234_v6  ;;  %v242_v12 = vld [vmem:[#allocation6 + $0x28] sm:$0xff]  ;;  %v241_v13 = vld [vmem:[#allocation6 + $0x20] sm:$0xff]  ;;  %v240_v14 = vld [vmem:[#allocation6 + $0x18] sm:$0xff]  ;;  %s700_s6 = scalar_lea.hbm %s699_s5, 8  ;;  %s704_s14 = scalar_lea.hbm %s952_s4, 16 }
  0x35   : > { %255 = vmatpush.msra.mxu0 %v250_v2  ;;  %v239_v15 = vld [vmem:[#allocation6 + $0x10] sm:$0xff]  ;;  %v238_v16 = vld [vmem:[#allocation6 + $0x8] sm:$0xff]  ;;  %v237_v17 = vld [vmem:[#allocation6] sm:$0xff]  ;;  %p701_p1 = scmp.ne.s32.totalorder %s699_s5, %s700_s6  ;;  %p705_p12 = scmp.lt.s32.totalorder %s699_s5, %s952_s4 }
  0x36   : > { %v895_v18 = vld [vmem:[%s950_s2] ss:$0 sm:$0xff]  ;;  %p706_p8 = scmp.lt.s32.totalorder %s704_s14, %s700_s6 }
  0x37   : > { %256 = vmatpush.msra.mxu0 %v249_v3  ;;  %p702_p3 = pnand %p701_p1, %p847_p13 }
  0x38   : > { %p707_p7 = por %p706_p8, %p705_p12 }
  0x39   : > { %257 = vmatpush.msra.mxu0 %v248_v5  ;;  %p703_p5 = pneg %p702_p3 }
  0x3b   : > { %258 = vmatpush.msra.mxu0 %v247_v7  ;;  %p708_p9 = pnand %p707_p7, %p703_p5 }
  0x3d   : > { %259 = vmatpush.msra.mxu0 %v246_v8 }
  0x3f   : > { %260 = vmatpush.msra.mxu0 %v245_v9 }
  0x41   : > { %261 = vmatpush.msra.mxu0 %v244_v10 }
  0x43   : > { %262 = vmatpush.msra.mxu0 %v243_v11 }
  0x45   : > { %263 = vmatpush.msra.mxu0 %v242_v12 }
  0x47   : > { %264 = vmatpush.msra.mxu0 %v241_v13 }
  0x49   : > { %265 = vmatpush.msra.mxu0 %v240_v14 }
  0x4b   : > { %266 = vmatpush.msra.mxu0 %v239_v15 }
  0x4d   : > { %267 = vmatpush.msra.mxu0 %v238_v16 }
  0x4f   : > { %268 = vmatpush.msra.mxu0 %v237_v17 }
  0x50   : > { %269 = vmatmul.f32.vlgmr.msra.gmra.mxu0 %v233_v4 }
  0xa7   : > { %v236_v22 = vpop.xlane.xlu0 %235 }
  0xa8   : > { %v284_v23 = vmax.f32 %v236_v22, 1e-30 }
  0xaa   : > { %608 = vrsqrt.f32 %v284_v23  ;;  %vm293_vm0 = vcmp.eq.f32.partialorder %v284_v23, inf  ;;  %v296_v31 = vand.u32 2147483648, %v284_v23  ;;  %vm295_vm1 = vcmp.eq.f32.partialorder %v284_v23, 0.0 }
  0xab   : > { %vm304_vm4 = vweird.f32 %v284_v23 }
  0xb0   : > { %v609_v24 = vpop.eup %608 }
  0xb1   : > { %v287_v25 = vmul.f32 %v609_v24, %v284_v23  ;;  %vm305_vm5 = vweird.f32 %v609_v24 }
  0xb2   : > { %vm306_vm6 = vmor %vm304_vm4, %vm305_vm5 }
  0xb3   : > { %v288_v26 = vmul.f32 %v609_v24, %v287_v25 }
  0xb5   : > { %v289_v27 = vmul.f32 0.5, %v288_v26 }
  0xb7   : > { %v290_v28 = vsub.f32 1.5, %v289_v27 }
  0xb9   : > { %v291_v29 = vmul.f32 %v609_v24, %v290_v28 }
  0xbb   : > { %v292_v30 = vmul.f32 %v291_v29, %v284_v23  ;;  %v307_v0 = vsel %vm306_vm6, %v609_v24, %v291_v29 }
  0xbd   : > { %v294_v32 = vsel %vm293_vm0, %v284_v23, %v292_v30  ;;  %v384_v30 = vstv %s274_s3 }
  0xbe   : > { %v297_v33 = vsel %vm295_vm1, %v296_v31, %v294_v32 }
  0xbf   : > { %v543_v34 = vclamps-f32 %v297_v33, 1.0 }
  0xc1   : > { %v341_v35 = vsub.f32 0.0, %v543_v34  ;;  %v332_v36 = vadd.f32 1.0, %v543_v34  ;;  %v335_v40 = vmul.f32 -0.5, %v543_v34  ;;  %v338_v47 = vand.u32 2147483647, %v543_v34 }
  0xc3   : > { %v342_v37 = vadd.f32 1.0, %v341_v35  ;;  %610 = vlog2.f32 %v332_v36  ;;  %v345_v41 = vmul.f32 -0.5, %v341_v35  ;;  %v336_v44 = vadd.f32 1.0, %v335_v40 }
  0xc4   : > { %v348_v48 = vand.u32 2147483647, %v341_v35  ;;  %vm339_vm2 = vcmp.lt.f32.partialorder %v338_v47, 0.0004427343 }
  0xc5   : > { %v346_v45 = vadd.f32 1.0, %v345_v41  ;;  %v337_v52 = vmul.f32 %v543_v34, %v336_v44 }
  0xc6   : > { %vm349_vm3 = vcmp.lt.f32.partialorder %v348_v48, 0.0004427343 }
  0xc7   : > { %v347_v54 = vmul.f32 %v346_v45, %v341_v35 }
  0xc9   : > { %v611_v42 = vpop.eup %610 }
  0xca   : > { %v334_v51 = vmul.f32 0.6931472, %v611_v42 }
  0xcc   : > { %v340_v57 = vsel %vm339_vm2, %v337_v52, %v334_v51 }
  0xcd   : > { %v897_v19 = vpop.f32.mrf.mxu0 }
  0xce   : > { %v281_v20 = vmul.f32 %v895_v18, %v897_v19  ;;  %v275_v21 = vmul.f32 %v897_v19, %v897_v19 }
  0xd0   : > { %282 = vadd.xlane.f32.xlu1 %v281_v20  ;;  %276 = vadd.xlane.f32.xlu0 %v275_v21 }
 0x143   : > { %v903_v38 = vpop.xlane.xlu0 %276  ;;  %v283_v27 = vpop.xlane.xlu1 %282 }
 0x144   : > { %v285_v39 = vmax.f32 %v903_v38, 1e-30  ;;  %vm356_vm9 = vcmp.eq.f32.partialorder %v903_v38, 0.0 }
 0x146   : > { %612 = vrsqrt.f32 %v285_v39  ;;  %vm315_vm7 = vcmp.eq.f32.partialorder %v285_v39, inf  ;;  %v318_v62 = vand.u32 2147483648, %v285_v39  ;;  %vm317_vm8 = vcmp.eq.f32.partialorder %v285_v39, 0.0 }
 0x147   : > { %614 = vlog2.f32 %v342_v37  ;;  %vm326_vm12 = vweird.f32 %v285_v39 }
 0x14c   : > { %v613_v43 = vpop.eup %612 }
 0x14d   : > { %v615_v46 = vpop.eup %614  ;;  %v309_v49 = vmul.f32 %v613_v43, %v285_v39  ;;  %vm327_vm10 = vweird.f32 %v613_v43 }
 0x14e   : > { %v344_v53 = vmul.f32 0.6931472, %v615_v46  ;;  %vm328_vm13 = vmor %vm326_vm12, %vm327_vm10 }
 0x14f   : > { %v310_v50 = vmul.f32 %v613_v43, %v309_v49 }
 0x150   : > { %v350_v58 = vsel %vm349_vm3, %v347_v54, %v344_v53 }
 0x151   : > { %v311_v55 = vmul.f32 0.5, %v310_v50  ;;  %v351_v60 = vsub.f32 %v340_v57, %v350_v58 }
 0x153   : > { %v312_v56 = vsub.f32 1.5, %v311_v55  ;;  %v352_v2 = vmul.f32 0.5, %v351_v60 }
 0x155   : > { %v313_v59 = vmul.f32 %v613_v43, %v312_v56 }
 0x157   : > { %v314_v61 = vmul.f32 %v313_v59, %v285_v39  ;;  %v329_v15 = vsel %vm328_vm13, %v613_v43, %v313_v59 }
 0x159   : > { %v316_v63 = vsel %vm315_vm7, %v285_v39, %v314_v61 }
 0x15a   : > { %v319_v1 = vsel %vm317_vm8, %v318_v62, %v316_v63 }
 0x15b   : > { %v353_v3 = vmul.f32 %v319_v1, %v307_v0 }
 0x15d   : > { %v354_v4 = vmul.f32 %v353_v3, %v352_v2 }
 0x15f   : > { %616 = vtanh.f32 %v354_v4 }
 0x165   : > { %v617_v5 = vpop.eup %616 }
 0x166   : > { %v359_v6 = vsel %vm356_vm9, 0.0, %v617_v5  ;;  %v357_v17 = vmul.f32 %v617_v5, %v329_v15 }
 0x167   : > { %v361_v7 = vmax.f32 %v359_v6, 1e-15  ;;  %vm360_vm1 = vcmp.gt.f32.partialorder %v359_v6, 0.996  ;;  %v379_v23 = vmin.f32 %v359_v6, 0.996 }
 0x168   : > { %v358_v24 = vsel %vm356_vm9, 0.0, %v357_v17 }
 0x169   : > { %618 = vrcp.f32 %v361_v7  ;;  %v373_v11 = vand.u32 2147483648, %v361_v7  ;;  %v371_v13 = vand.u32 2147483647, %v361_v7  ;;  %vm367_vm14 = vweird.f32 %v361_v7 }
 0x16a   : > { %v380_v28 = vmul.f32 %v379_v23, %v379_v23 }
 0x16b   : > { %v374_v16 = vor.u32 1.1754944e-38, %v373_v11  ;;  %vm372_vm0 = vcmp.eq.f32.partialorder %v371_v13, 8.507059e+37 }
 0x16c   : > { %v387_v33 = vmul.f32 %v384_v30, %v380_v28  ;;  %v386_v39 = vsub.f32 1.0, %v380_v28 }
 0x16e   : > { %v411_v46 = vmul.f32 %v386_v39, %v386_v39 }
 0x16f   : > { %v619_v8 = vpop.eup %618 }
 0x170   : > { %v363_v9 = vmul.f32 %v619_v8, %v361_v7  ;;  %vm368_vm11 = vweird.f32 %v619_v8  ;;  %v412_v54 = vmul.f32 %v411_v46, %v384_v30 }
 0x171   : > { %vm369_vm15 = vmor %vm367_vm14, %vm368_vm11 }
 0x172   : > { %v364_v10 = vsub.f32 1.0, %v363_v9 }
 0x174   : > { %v365_v12 = vmul.f32 %v619_v8, %v364_v10 }
 0x176   : > { %v366_v14 = vadd.f32 %v619_v8, %v365_v12 }
 0x178   : > { %v370_v20 = vsel %vm369_vm15, %v619_v8, %v366_v14 }
 0x179   : > { %v375_v21 = vsel %vm372_vm0, %v374_v16, %v370_v20 }
 0x17a   : > { %v376_v22 = vmul.f32 0.996, %v375_v21 }
 0x17c   : > { %v377_v25 = vsel %vm360_vm1, %v376_v22, 1.0 }
 0x17d   : > { %v378_v26 = vmul.f32 %v377_v25, %v358_v24 }
 0x17f   : > { %v381_v29 = vmul.f32 %v378_v26, %v283_v27 }
 0x181   : > { %v382_v31 = vmul.f32 2.0, %v381_v29 }
 0x183   : > { %v383_v32 = vadd.f32 1.0, %v382_v31 }
 0x185   : > { %v388_v34 = vadd.f32 %v387_v33, %v383_v32  ;;  %v385_v35 = vadd.f32 %v384_v30, %v383_v32 }
 0x187   : > { %v389_v36 = vmax.f32 %v388_v34, 1e-15  ;;  %v407_v37 = vmul.f32 2.0, %v385_v35  ;;  %v405_v38 = vmul.f32 %v385_v35, %v385_v35 }
 0x189   : > { %620 = vrcp.f32 %v389_v36  ;;  %v408_v40 = vmul.f32 %v407_v37, %v386_v39  ;;  %v401_v45 = vand.u32 2147483648, %v389_v36  ;;  %v399_v48 = vand.u32 2147483647, %v389_v36 }
 0x18a   : > { %v406_v49 = vmul.f32 %v405_v38, %v380_v28  ;;  %vm395_vm3 = vweird.f32 %v389_v36 }
 0x18b   : > { %v409_v44 = vmul.f32 %v408_v40, %v381_v29  ;;  %v402_v52 = vor.u32 1.1754944e-38, %v401_v45  ;;  %vm400_vm5 = vcmp.eq.f32.partialorder %v399_v48, 8.507059e+37 }
 0x18d   : > { %v410_v51 = vadd.f32 %v409_v44, %v406_v49 }
 0x18f   : > { %v621_v41 = vpop.eup %620  ;;  %v413_v57 = vadd.f32 %v412_v54, %v410_v51 }
 0x190   : > { %v391_v42 = vmul.f32 %v621_v41, %v389_v36  ;;  %vm396_vm2 = vweird.f32 %v621_v41 }
 0x191   : > { %vm397_vm4 = vmor %vm395_vm3, %vm396_vm2 }
 0x192   : > { %v392_v43 = vsub.f32 1.0, %v391_v42 }
 0x194   : > { %v393_v47 = vmul.f32 %v621_v41, %v392_v43 }
 0x196   : > { %v394_v50 = vadd.f32 %v621_v41, %v393_v47 }
 0x198   : > { %v398_v53 = vsel %vm397_vm4, %v621_v41, %v394_v50 }
 0x199   : > { %v403_v55 = vsel %vm400_vm5, %v402_v52, %v398_v53 }
 0x19a   : > { %v404_v56 = vmul.f32 %v403_v55, %v403_v55 }
 0x19c   : > { %v414_v58 = vmul.f32 %v413_v57, %v404_v56 }
 0x19e   : > { %v416_v59 = vmax.f32 %v414_v58, 1e-30  ;;  %vm415_vm9 = vcmp.gt.f32.partialorder %v414_v58, 0.99201596 }
 0x1a0   : > { %622 = vrsqrt.f32 %v416_v59  ;;  %vm423_vm7 = vweird.f32 %v416_v59 }
 0x1a6   : > { %v623_v60 = vpop.eup %622 }
 0x1a7   : > { %v418_v61 = vmul.f32 %v623_v60, %v416_v59  ;;  %vm424_vm6 = vweird.f32 %v623_v60 }
 0x1a8   : > { %vm425_vm8 = vmor %vm423_vm7, %vm424_vm6 }
 0x1a9   : > { %v419_v62 = vmul.f32 %v623_v60, %v418_v61 }
 0x1ab   : > { %v420_v63 = vmul.f32 0.5, %v419_v62 }
 0x1ad   : > { %v421_v0 = vsub.f32 1.5, %v420_v63 }
 0x1af   : > { %v422_v1 = vmul.f32 %v623_v60, %v421_v0 }
 0x1b1   : > { %v426_v2 = vsel %vm425_vm8, %v623_v60, %v422_v1 }
 0x1b2   : > { %v427_v3 = vmul.f32 0.996, %v426_v2 }
 0x1b4   : > { %v428_v4 = vsel %vm415_vm9, %v427_v3, 1.0 }
 0x1b5   : > { %v429_v5 = vmul.f32 %v428_v4, %v403_v55 }
 0x1b7   : > { %v430_v6 = vmul.f32 %v429_v5, %v385_v35  ;;  %v432_v7 = vmul.f32 %v429_v5, %v386_v39 }
 0x1b9   : > { %v431_v8 = vmul.f32 %v430_v6, %v378_v26  ;;  %v434_v10 = vmul.f32 %v895_v18, %v432_v7 }
 0x1bb   : > { %v433_v9 = vmul.f32 %v431_v8, %v897_v19 }
 0x1bd   : > { %v435_v11 = vadd.f32 %v434_v10, %v433_v9 }
 0x1bf   : > { %436 = vst [vmem:[%s232_s27] sm:$0xff] %v435_v11 }
 0x1c0   : > { %711 = shalt.err (!%p708_p9)
}
 0x1c1   : > { %554 = dma.vmem_to_hbm [thread:$0]  (%p847_p13), %s451_s28, 128, %s453_s29, %s438_s23  }
 0x1c2 PF: > { %s464_s10 = sand.u32 1, %s742_s17   ;;  %p958_p10 = scmp.ge.s32.totalorder %s754_s20, 2 }
 0x1c3   : > { %s465_s24 = scalar_lea.sflag [#allocation5], %s464_s10 }
 0x1c4   : > { %p565_p11 = pnand %p958_p10, %p852_p4 }
 0x1c6   : > { %p566_p0 = pneg %p565_p11 }
 0x1c8   : > { %737 = dma.done.wait (%p566_p0), %s465_s24, 128  }
 0x1c9   : > { %739 = vsyncadd (%p566_p0), %s465_s24, 4294967168  ;;  %p19_p2 = scmp.ge.s32.totalorder %s827_s30, 4   ;;  %s959_s17 = smov %s746_s18 }
 0x1ca   : > { %s960_s18 = smov %s750_s19  ;;  %s961_s19 = smov %s839_s7 }
 0x1cb   : > { %s962_s20 = smov %s827_s30  ;;  %21 = sbr.rel (!%p19_p2) target bundleno = 8 (0x8), region = 85 }
 0x1d0   :  { %471 = vsyncpa [#allocation4], 1 }
 0x1d1   :  { %473 = vsyncpa [#allocation4 + $0x1], 1 }
 0x1d2   :  { %474 = vsyncpa [#allocation7], 1 }
 0x1d3   :  { %475 = vsyncpa [#allocation5], 1 }
 0x1d4   :  { %477 = vsyncpa [#allocation5 + $0x1], 1 }

</bundles_post_ra>
